<compile_context>
chip_gen: v7x
topology: tpu7x:2x2x1
jax: 0.10.0
libtpu: 0.0.40
codegen_flags: <defaults>
</compile_context>

<pallas_src>
import functools

import jax
import jax.numpy as jnp
from jax import lax
from jax.experimental import pallas as pl
from jax.experimental.pallas import tpu as pltpu


def _round_up(x, m):
    return ((x + m - 1) // m) * m


def _box_offset_kernel(x_ref, w1t_ref, b1_ref, w2t_ref, b2_ref, o_ref, *,
                       n_conj, d_out, unroll):
    """One batch tile.

    x_ref  : (N, tB, D)  streamed in matmul_dtype
    w1t    : (D, Dp)     pre-transposed, pre-cast      b1 : (1, Dp) f32
    w2t    : (Dp, Dp)    pre-transposed, pre-cast      b2 : (1, Dp) f32
    o_ref  : (tB, D)
    """
    # Hoisted loads (weights/biases are grid-resident; no per-step casts).
    w1t = w1t_ref[...]
    w2t = w2t_ref[...]
    b1 = b1_ref[...]
    b2 = b2_ref[...]

    def layer1(xn):
        # MXU matmul with f32 accumulation; bias + relu in f32.
        h = jnp.dot(xn, w1t, preferred_element_type=jnp.float32) + b1
        return jnp.maximum(h, 0.0)

    # n == 0 initializes both running reductions; remaining conjuncts are
    # folded in-register, so no (N, tB, Dp) intermediate ever lives in VMEM.
    x0 = x_ref[0]                                     # (tB, D)
    init = (layer1(x0), x0)

    def body(n, carry):
        sum_h, run_min = carry
        xn = x_ref[n]
        return sum_h + layer1(xn), jnp.minimum(run_min, xn)

    sum_h, offset = lax.fori_loop(1, n_conj, body, init, unroll=unroll)

    mean_h = (sum_h * (1.0 / n_conj)).astype(w2t.dtype)
    g = jnp.dot(mean_h, w2t, preferred_element_type=jnp.float32) + b2
    gate = jax.nn.sigmoid(g)                          # EUP transcendental
    if d_out != gate.shape[-1]:
        gate = gate[:, :d_out]
    o_ref[...] = (offset.astype(jnp.float32) * gate).astype(o_ref.dtype)


def box_offset_intersection(embeddings, w1, b1, w2, b2, *,
                            block_b=512, matmul_dtype=jnp.bfloat16):
    """embeddings: (N, B, D); w1/w2: (D, D) torch.nn.Linear layout; b1/b2: (D,)."""
    N, B, D = embeddings.shape
    out_dtype = embeddings.dtype

    # Lane-dense hidden width (only the small weights are padded; x is not).
    Dp = _round_up(max(D, 128), 128)
    pd = Dp - D

    # Stream x in the MXU dtype (halves HBM traffic for f32 callers).  The
    # running min is therefore computed in this dtype as well (bf16-rounded
    # when matmul_dtype=bf16; use matmul_dtype=f32 for exact min/strict mode).
    x = embeddings if embeddings.dtype == matmul_dtype \
        else embeddings.astype(matmul_dtype)

    # Pre-transpose + pre-cast weights once; w1t keeps contraction dim = D so
    # un-padded x can feed it directly.  Zero padding keeps padded lanes zero
    # through layer1 / mean; the gate's padded lanes are sliced off in-kernel.
    w1t = jnp.pad(w1, ((0, 0), (0, 0))).T
    w1t = jnp.pad(w1t, ((0, 0), (0, pd))).astype(matmul_dtype)       # (D, Dp)
    w2t = jnp.pad(w2.T, ((0, pd), (0, pd))).astype(matmul_dtype)     # (Dp, Dp)
    b1p = jnp.pad(b1.astype(jnp.float32), (0, pd)).reshape(1, Dp)
    b2p = jnp.pad(b2.astype(jnp.float32), (0, pd)).reshape(1, Dp)

    # --- Batch tile selection -------------------------------------------------
    sub = 8
    if B <= sub:
        tB = B                                   # tiny batch: one exact tile
    else:
        # Aim for >= 2 tiles so both v7x TensorCores are fed.
        tB = min(block_b, _round_up(-(-B // 2), sub))

    # VMEM budget per generation (v7x: 64 MiB/core; v5e/v6e: 128 MiB).
    try:
        info = pltpu.get_tpu_info()
        vmem_cap = int(getattr(info, "vmem_capacity_bytes", 0)) or (64 << 20)
    except Exception:
        vmem_cap = 64 << 20
    budget = (vmem_cap * 3) // 4

    x_item = jnp.dtype(matmul_dtype).itemsize
    out_item = jnp.dtype(out_dtype).itemsize

    def vmem_need(tb):
        return (2 * N * tb * D * x_item            # double-buffered x block
                + 2 * (D + Dp) * Dp * x_item       # w1t + w2t (2 bufs, worst case)
                + 4 * Dp * 4                       # biases
                + 2 * tb * D * out_item            # double-buffered out block
                + (2 * Dp + 2 * D) * tb * 4)       # f32 accumulators / live regs

    while tB > sub and vmem_need(tB) > budget:
        tB = max(sub, _round_up(tB // 2, sub))

    n_tiles = -(-B // tB)                          # cdiv; ragged last tile ok
    vmem_limit = int(min(max(2 * vmem_need(tB), 32 << 20), budget))

    bw = n_tiles * tB                              # worked (incl. ragged) rows
    cost = pl.CostEstimate(
        flops=2 * N * bw * D * Dp + 2 * bw * Dp * Dp + 4 * N * bw * Dp,
        transcendentals=bw * Dp,
        bytes_accessed=(N * B * D * x_item + (D + Dp) * Dp * x_item
                        + 2 * Dp * 4 + B * D * out_item),
    )

    kernel = functools.partial(_box_offset_kernel, n_conj=N, d_out=D,
                               unroll=(True if N <= 8 else 4))

    out = pl.pallas_call(
        kernel,
        out_shape=jax.ShapeDtypeStruct((B, D), out_dtype),
        grid=(n_tiles,),
        in_specs=[
            pl.BlockSpec((N, tB, D), lambda i: (0, i, 0)),   # stream B tiles of x
            pl.BlockSpec((D, Dp), lambda i: (0, 0)),          # w1^T resident
            pl.BlockSpec((1, Dp), lambda i: (0, 0)),          # b1 resident
            pl.BlockSpec((Dp, Dp), lambda i: (0, 0)),         # w2^T resident
            pl.BlockSpec((1, Dp), lambda i: (0, 0)),          # b2 resident
        ],
        out_specs=pl.BlockSpec((tB, D), lambda i: (i, 0)),
        compiler_params=pltpu.CompilerParams(
            dimension_semantics=("parallel",),                # shard B tiles over TCs
            vmem_limit_bytes=vmem_limit,
        ),
        cost_estimate=cost,
    )(x, w1t, b1p, w2t, b2p)

    return out


def _init_params(key, dim):
    """Deterministic init matching the PyTorch module's shapes."""
    k1, k2, k3, k4 = jax.random.split(key, 4)
    xavier_bound = (6.0 / (dim + dim)) ** 0.5
    bias_bound = 1.0 / (dim ** 0.5)
    w1 = jax.random.uniform(k1, (dim, dim), jnp.float32, -xavier_bound, xavier_bound)
    w2 = jax.random.uniform(k2, (dim, dim), jnp.float32, -xavier_bound, xavier_bound)
    b1 = jax.random.uniform(k3, (dim,), jnp.float32, -bias_bound, bias_bound)
    b2 = jax.random.uniform(k4, (dim,), jnp.float32, -bias_bound, bias_bound)
    return w1, b1, w2, b2


def _reference(embeddings, w1, b1, w2, b2):
    """Pure-JAX reference of the PyTorch forward (for correctness check)."""
    h = jax.nn.relu(jnp.einsum("nbd,ed->nbe", embeddings, w1) + b1)
    m = jnp.mean(h, axis=0)
    gate = jax.nn.sigmoid(jnp.einsum("bd,ed->be", m, w2) + b2)
    offset = jnp.min(embeddings, axis=0)
    return offset * gate


if __name__ == "__main__":
    key = jax.random.PRNGKey(0)
    k_emb, k_par = jax.random.split(key)

    N, B, D = 4, 8, 32          # num conjuncts, batch, hidden dim
    embeddings = jax.random.normal(k_emb, (N, B, D), dtype=jnp.float32)
    w1, b1, w2, b2 = _init_params(k_par, D)

    ref = _reference(embeddings, w1, b1, w2, b2)

    # Strict check: f32 MXU operands, f32 streaming, exact-precision min.
    out_f32 = jax.block_until_ready(
        box_offset_intersection(embeddings, w1, b1, w2, b2,
                                matmul_dtype=jnp.float32))
    assert out_f32.shape == (B, D)
    assert jnp.allclose(out_f32, ref, atol=2e-4, rtol=2e-4), "f32 mismatch vs reference"

    # Production path: bf16 streaming + bf16 MXU operands (f32 accumulation).
    out_bf16 = jax.block_until_ready(
        box_offset_intersection(embeddings, w1, b1, w2, b2,
                                matmul_dtype=jnp.bfloat16))
    assert out_bf16.shape == (B, D)
    assert jnp.allclose(out_bf16, ref, atol=1e-1, rtol=1e-1), "bf16 mismatch vs reference"

    print("KERNEL_OK")
</pallas_src>

<mosaic_0001>
module attributes {stable_mosaic.version = 11 : i64} {
  func.func @_box_offset_kernel(%arg0: i32, %arg1: memref<4x8x32xf32, #tpu.memory_space<vmem>>, %arg2: memref<32x128xf32, #tpu.memory_space<vmem>>, %arg3: memref<1x128xf32, #tpu.memory_space<vmem>>, %arg4: memref<128x128xf32, #tpu.memory_space<vmem>>, %arg5: memref<1x128xf32, #tpu.memory_space<vmem>>, %arg6: memref<8x32xf32, #tpu.memory_space<vmem>>) attributes {dimension_semantics = [#tpu.dimension_semantics<parallel>], iteration_bounds = array<i64: 1>, scalar_prefetch = 0 : i64, scratch_operands = 0 : i64, tpu.core_type = #tpu.core_type<tc>, window_params = [{transform_indices = @transform_0, window_bounds = array<i64: 4, 8, 32>}, {pipeline_mode = #tpu.pipeline_mode<synchronous>, transform_indices = @transform_1, window_bounds = array<i64: 32, 128>}, {pipeline_mode = #tpu.pipeline_mode<synchronous>, transform_indices = @transform_2, window_bounds = array<i64: 1, 128>}, {pipeline_mode = #tpu.pipeline_mode<synchronous>, transform_indices = @transform_3, window_bounds = array<i64: 128, 128>}, {pipeline_mode = #tpu.pipeline_mode<synchronous>, transform_indices = @transform_4, window_bounds = array<i64: 1, 128>}, {transform_indices = @transform_5, window_bounds = array<i64: 8, 32>}]} {
    %c0 = arith.constant 0 : index
    %c0_0 = arith.constant 0 : index
    %0 = vector.load %arg2[%c0, %c0_0] : memref<32x128xf32, #tpu.memory_space<vmem>>, vector<32x128xf32>
    %c0_1 = arith.constant 0 : index
    %c0_2 = arith.constant 0 : index
    %1 = vector.load %arg4[%c0_1, %c0_2] : memref<128x128xf32, #tpu.memory_space<vmem>>, vector<128x128xf32>
    %c0_3 = arith.constant 0 : index
    %c0_4 = arith.constant 0 : index
    %2 = vector.load %arg3[%c0_3, %c0_4] : memref<1x128xf32, #tpu.memory_space<vmem>>, vector<1x128xf32>
    %c0_5 = arith.constant 0 : index
    %c0_6 = arith.constant 0 : index
    %3 = vector.load %arg5[%c0_5, %c0_6] : memref<1x128xf32, #tpu.memory_space<vmem>>, vector<1x128xf32>
    %c0_7 = arith.constant 0 : index
    %c0_8 = arith.constant 0 : index
    %c0_9 = arith.constant 0 : index
    %4 = vector.load %arg1[%c0_7, %c0_8, %c0_9] : memref<4x8x32xf32, #tpu.memory_space<vmem>>, vector<1x8x32xf32>
    %5 = vector.shape_cast %4 : vector<1x8x32xf32> to vector<8x32xf32>
    %cst = arith.constant dense<0.000000e+00> : vector<8x128xf32>
    %6 = tpu.matmul %5, %0, %cst {dimension_numbers = #tpu.dot_dimension_numbers<[1], [0], [0], [1], [0, 0, 1, 1], [], []>} : vector<8x32xf32>, vector<32x128xf32>, vector<8x128xf32> -> vector<8x128xf32>
    %7 = vector.broadcast %2 : vector<1x128xf32> to vector<8x128xf32>
    %8 = arith.addf %6, %7 : vector<8x128xf32>
    %cst_10 = arith.constant 0.000000e+00 : f32
    %9 = vector.broadcast %cst_10 : f32 to vector<8x128xf32>
    %10 = arith.maximumf %8, %9 : vector<8x128xf32>
    %c1_i32 = arith.constant 1 : i32
    %11 = arith.index_cast %c1_i32 : i32 to index
    %c0_11 = arith.constant 0 : index
    %c0_12 = arith.constant 0 : index
    %12 = vector.load %arg1[%11, %c0_11, %c0_12] : memref<4x8x32xf32, #tpu.memory_space<vmem>>, vector<1x8x32xf32>
    %13 = vector.shape_cast %12 : vector<1x8x32xf32> to vector<8x32xf32>
    %cst_13 = arith.constant dense<0.000000e+00> : vector<8x128xf32>
    %14 = tpu.matmul %13, %0, %cst_13 {dimension_numbers = #tpu.dot_dimension_numbers<[1], [0], [0], [1], [0, 0, 1, 1], [], []>} : vector<8x32xf32>, vector<32x128xf32>, vector<8x128xf32> -> vector<8x128xf32>
    %15 = vector.broadcast %2 : vector<1x128xf32> to vector<8x128xf32>
    %16 = arith.addf %14, %15 : vector<8x128xf32>
    %cst_14 = arith.constant 0.000000e+00 : f32
    %17 = vector.broadcast %cst_14 : f32 to vector<8x128xf32>
    %18 = arith.maximumf %16, %17 : vector<8x128xf32>
    %19 = arith.addf %10, %18 : vector<8x128xf32>
    %20 = arith.minimumf %5, %13 : vector<8x32xf32>
    %c2_i32 = arith.constant 2 : i32
    %21 = arith.index_cast %c2_i32 : i32 to index
    %c0_15 = arith.constant 0 : index
    %c0_16 = arith.constant 0 : index
    %22 = vector.load %arg1[%21, %c0_15, %c0_16] : memref<4x8x32xf32, #tpu.memory_space<vmem>>, vector<1x8x32xf32>
    %23 = vector.shape_cast %22 : vector<1x8x32xf32> to vector<8x32xf32>
    %cst_17 = arith.constant dense<0.000000e+00> : vector<8x128xf32>
    %24 = tpu.matmul %23, %0, %cst_17 {dimension_numbers = #tpu.dot_dimension_numbers<[1], [0], [0], [1], [0, 0, 1, 1], [], []>} : vector<8x32xf32>, vector<32x128xf32>, vector<8x128xf32> -> vector<8x128xf32>
    %25 = vector.broadcast %2 : vector<1x128xf32> to vector<8x128xf32>
    %26 = arith.addf %24, %25 : vector<8x128xf32>
    %cst_18 = arith.constant 0.000000e+00 : f32
    %27 = vector.broadcast %cst_18 : f32 to vector<8x128xf32>
    %28 = arith.maximumf %26, %27 : vector<8x128xf32>
    %29 = arith.addf %19, %28 : vector<8x128xf32>
    %30 = arith.minimumf %20, %23 : vector<8x32xf32>
    %c3_i32 = arith.constant 3 : i32
    %31 = arith.index_cast %c3_i32 : i32 to index
    %c0_19 = arith.constant 0 : index
    %c0_20 = arith.constant 0 : index
    %32 = vector.load %arg1[%31, %c0_19, %c0_20] : memref<4x8x32xf32, #tpu.memory_space<vmem>>, vector<1x8x32xf32>
    %33 = vector.shape_cast %32 : vector<1x8x32xf32> to vector<8x32xf32>
    %cst_21 = arith.constant dense<0.000000e+00> : vector<8x128xf32>
    %34 = tpu.matmul %33, %0, %cst_21 {dimension_numbers = #tpu.dot_dimension_numbers<[1], [0], [0], [1], [0, 0, 1, 1], [], []>} : vector<8x32xf32>, vector<32x128xf32>, vector<8x128xf32> -> vector<8x128xf32>
    %35 = vector.broadcast %2 : vector<1x128xf32> to vector<8x128xf32>
    %36 = arith.addf %34, %35 : vector<8x128xf32>
    %cst_22 = arith.constant 0.000000e+00 : f32
    %37 = vector.broadcast %cst_22 : f32 to vector<8x128xf32>
    %38 = arith.maximumf %36, %37 : vector<8x128xf32>
    %39 = arith.addf %29, %38 : vector<8x128xf32>
    %40 = arith.minimumf %30, %33 : vector<8x32xf32>
    %c3_i32_23 = arith.constant 3 : i32
    %cst_24 = arith.constant 2.500000e-01 : f32
    %41 = vector.broadcast %cst_24 : f32 to vector<8x128xf32>
    %42 = arith.mulf %39, %41 : vector<8x128xf32>
    %cst_25 = arith.constant dense<0.000000e+00> : vector<8x128xf32>
    %43 = tpu.matmul %42, %1, %cst_25 {dimension_numbers = #tpu.dot_dimension_numbers<[1], [0], [0], [1], [0, 0, 1, 1], [], []>} : vector<8x128xf32>, vector<128x128xf32>, vector<8x128xf32> -> vector<8x128xf32>
    %44 = vector.broadcast %3 : vector<1x128xf32> to vector<8x128xf32>
    %45 = arith.addf %43, %44 : vector<8x128xf32>
    %46 = arith.negf %45 : vector<8x128xf32>
    %47 = math.exp %46 : vector<8x128xf32>
    %cst_26 = arith.constant 1.000000e+00 : f32
    %48 = vector.broadcast %cst_26 : f32 to vector<8x128xf32>
    %49 = arith.addf %48, %47 : vector<8x128xf32>
    %50 = arith.divf %48, %49 : vector<8x128xf32>
    %51 = vector.extract_strided_slice %50 {offsets = [0, 0], sizes = [8, 32], strides = [1, 1]} : vector<8x128xf32> to vector<8x32xf32>
    %52 = arith.mulf %40, %51 : vector<8x32xf32>
    %c0_27 = arith.constant 0 : index
    %c0_28 = arith.constant 0 : index
    %53 = vector.load %arg6[%c0_27, %c0_28] : memref<8x32xf32, #tpu.memory_space<vmem>>, vector<8x32xf32>
    tpu.vector_store %arg6[%c0_27, %c0_28], %52 {strides = array<i32>} : memref<8x32xf32, #tpu.memory_space<vmem>>, vector<8x32xf32>,
    return
  }
  func.func @transform_0(%arg0: i32) -> (i32, i32, i32) {
    %c0_i32 = arith.constant 0 : i32
    %c0_i32_0 = arith.constant 0 : i32
    %c0_i32_1 = arith.constant 0 : i32
    return %c0_i32, %arg0, %c0_i32_0 : i32, i32, i32
  }
  func.func @transform_1(%arg0: i32) -> (i32, i32) {
    %c0_i32 = arith.constant 0 : i32
    %c0_i32_0 = arith.constant 0 : i32
    %c0_i32_1 = arith.constant 0 : i32
    return %c0_i32, %c0_i32_0 : i32, i32
  }
  func.func @transform_2(%arg0: i32) -> (i32, i32) {
    %c0_i32 = arith.constant 0 : i32
    %c0_i32_0 = arith.constant 0 : i32
    %c0_i32_1 = arith.constant 0 : i32
    return %c0_i32, %c0_i32_0 : i32, i32
  }
  func.func @transform_3(%arg0: i32) -> (i32, i32) {
    %c0_i32 = arith.constant 0 : i32
    %c0_i32_0 = arith.constant 0 : i32
    %c0_i32_1 = arith.constant 0 : i32
    return %c0_i32, %c0_i32_0 : i32, i32
  }
  func.func @transform_4(%arg0: i32) -> (i32, i32) {
    %c0_i32 = arith.constant 0 : i32
    %c0_i32_0 = arith.constant 0 : i32
    %c0_i32_1 = arith.constant 0 : i32
    return %c0_i32, %c0_i32_0 : i32, i32
  }
  func.func @transform_5(%arg0: i32) -> (i32, i32) {
    %c0_i32 = arith.constant 0 : i32
    %c0_i32_0 = arith.constant 0 : i32
    return %arg0, %c0_i32 : i32, i32
  }
}

</mosaic_0001>

<bundles_post_ra>
// kernel: tpu_custom_call.1
= control target key start
LH: loop header
LB: loop body
LE: loop exit
PB: predicated region body
PF: predicated region fallthrough
CT: control target
= control target key end

     0   :  { %10 = vsyncpa [#allocation3], 0  ;;  %s924_s0 = inlined_call_operand.hbm [shape: f32[4,8,32], index: 0, kind: input, shape index: {}]   ;;  %s925_s1 = inlined_call_operand.hbm [shape: f32[32,128], index: 1, kind: input, shape index: {}]   ;;  %s926_s2 = inlined_call_operand.vmem [shape: f32[1,128], index: 2, kind: input, shape index: {}]   ;;  %s927_s3 = inlined_call_operand.hbm [shape: f32[128,128], index: 3, kind: input, shape index: {}]   ;;  %s928_s4 = inlined_call_operand.vmem [shape: f32[1,128], index: 4, kind: input, shape index: {}]   ;;  %s929_s5 = inlined_call_operand.hbm [shape: f32[8,32], index: 5, kind: output, shape index: {}]  }
   0x1   :  { %11 = vsyncpa [#allocation6], 0 }
   0x2   :  { %12 = vsyncpa [#allocation4], 0  ;;  %s779_s18 = smov [#allocation5]   ;;  %s780_s20 = smov [#allocation2]  }
   0x3   :  { %s30_s19 = sshll.u32 %s779_s18, 4  ;;  %s18_s21 = sshll.u32 %s780_s20, 4  ;;  %s31_s19 = int_to_ptr.vmem [resolvable:$true] %s30_s19  ;;  %s818_s21 = int_to_ptr.vmem [resolvable:$true] %s18_s21 }
   0x4   :  { %s685_s24 = scalar_lea.hbm %s925_s1, 512 }
   0x5   :  { %p686_p0 = scmp.ne.s32.totalorder %s925_s1, %s685_s24  ;;  %p689_p1 = scmp.lt.u32.totalorder %s685_s24, %s925_s1 }
   0x7   :  { %p691_p2 = pnand %p689_p1, %p686_p0 }
   0x9   :  { %694 = shalt.err (!%p691_p2)
}
   0xa   :  { %s695_s29 = scalar_lea.vmem %s31_s19, 512  ;;  %p700_p4 = scmp.lt.s32.totalorder %s31_s19, %s31_s19 }
   0xb   :  { %p696_p3 = scmp.ne.s32.totalorder %s31_s19, %s695_s29  ;;  %p701_p5 = scmp.lt.s32.totalorder %s695_s29, %s695_s29 }
   0xd   :  { %p702_p6 = por %p701_p5, %p700_p4 }
   0xf   :  { %p703_p7 = pnand %p702_p6, %p696_p3 }
  0x11   :  { %706 = shalt.err (!%p703_p7)
}
  0x12   :  { %s781_s30 = smov 128   ;;  %s782_s6 = smov 8  }
  0x13   :  { %36 = dma.hbm_to_vmem [thread:$0]  %s925_s1, 512, %s31_s19, [#allocation6], %s781_s30, %s781_s30, %s782_s6  }
  0x14   :  { %s707_s11 = scalar_lea.hbm %s924_s0, 512 }
  0x15   :  { %p708_p8 = scmp.ne.s32.totalorder %s924_s0, %s707_s11  ;;  %p711_p9 = scmp.lt.u32.totalorder %s707_s11, %s924_s0 }
  0x17   :  { %p713_p10 = pnand %p711_p9, %p708_p8 }
  0x19   :  { %716 = shalt.err (!%p713_p10)
}
  0x1a   :  { %s717_s16 = scalar_lea.vmem %s818_s21, 512  ;;  %p722_p12 = scmp.lt.s32.totalorder %s818_s21, %s818_s21 }
  0x1b   :  { %p718_p11 = scmp.ne.s32.totalorder %s818_s21, %s717_s16  ;;  %p723_p13 = scmp.lt.s32.totalorder %s717_s16, %s717_s16 }
  0x1d   :  { %p724_p0 = por %p723_p13, %p722_p12 }
  0x1f   :  { %p725_p1 = pnand %p724_p0, %p718_p11 }
  0x21   :  { %728 = shalt.err (!%p725_p1)
}
  0x22   :  { %24 = dma.hbm_to_vmem [thread:$0]  %s924_s0, 512, %s818_s21, [#allocation3], %s781_s30, %s781_s30, %s782_s6  }
  0x23   :  { %s783_s18 = smov [#allocation7]   ;;  %s729_s23 = scalar_lea.hbm %s927_s3, 2048 }
  0x24   :  { %s44_s19 = sshll.u32 %s783_s18, 4  ;;  %p730_p2 = scmp.ne.s32.totalorder %s927_s3, %s729_s23  ;;  %s45_s19 = int_to_ptr.vmem [resolvable:$true] %s44_s19 }
  0x25   :  { %p733_p3 = scmp.lt.u32.totalorder %s729_s23, %s927_s3 }
  0x27   :  { %p735_p4 = pnand %p733_p3, %p730_p2 }
  0x29   :  { %738 = shalt.err (!%p735_p4)
}
  0x2a   :  { %s739_s28 = scalar_lea.vmem %s45_s19, 2048  ;;  %p744_p6 = scmp.lt.s32.totalorder %s45_s19, %s45_s19 }
  0x2b   :  { %p740_p5 = scmp.ne.s32.totalorder %s45_s19, %s739_s28  ;;  %p745_p7 = scmp.lt.s32.totalorder %s739_s28, %s739_s28 }
  0x2d   :  { %p746_p8 = por %p745_p7, %p744_p6 }
  0x2f   :  { %p747_p9 = pnand %p746_p8, %p740_p5 }
  0x31   :  { %750 = shalt.err (!%p747_p9)
}
  0x32   :  { %50 = dma.hbm_to_vmem [thread:$0]  %s927_s3, 2048, %s45_s19, [#allocation6], %s781_s30, %s781_s30, %s782_s6  }
  0x33   :  { %773 = dma.done.wait [#allocation3], 512  }
  0x34   :  { %774 = vsyncadd [#allocation3], 4294966784 }
  0x35   :  { %775 = dma.done.wait [#allocation6], 2560  }
  0x36   :  { %776 = vsyncadd [#allocation6], 4294964736  ;;  %v784_v0 = vmov 0.0|0.0   ;;  %vm785_vm0 = vmmov 0   ;;  %v786_v1 = vmov 0.0   ;;  %v62_v2 = vld [vmem:[#allocation5] sm:$0xff] }
  0x37   :  { %624 = vmatprep.subr.bf16.mxu1 %v784_v0  ;;  %553 = vmatprep.mubr.msk.f32.mxu1 %vm785_vm0, %v786_v1  ;;  %v63_v3 = vld [vmem:[#allocation5 + $0x8] sm:$0xff]  ;;  %v64_v4 = vld [vmem:[#allocation5 + $0x10] sm:$0xff]  ;;  %v65_v6 = vld [vmem:[#allocation5 + $0x18] sm:$0xff]  ;;  %vm91_vm1 = vcmask 261120   ;;  %s787_s6 = smov [#allocation8]  }
  0x38   :  { %648 = vmatprep.subr.bf16.mxu0 %v784_v0  ;;  %621 = vmatprep.mubr.msk.f32.mxu0 %vm785_vm0, %v786_v1  ;;  %v625_v5 = vpack.c.bf16 %v63_v3, %v62_v2  ;;  %v84_v7 = vld [vmem:[#allocation2] sm:$0xff]  ;;  %v167_v8 = vld [vmem:[#allocation2 + $0x8] sm:$0xff]  ;;  %v628_v10 = vpack.c.bf16 %v65_v6, %v64_v4  ;;  %v245_v11 = vld [vmem:[#allocation2 + $0x10] sm:$0xff]  ;;  %s491_s7 = sshll.u32 %s787_s6, 4  ;;  %s492_s7 = int_to_ptr.vmem [resolvable:$true] %s491_s7 }
  0x39   :  { %v243_v9 = vmin.f32 %v84_v7, %v167_v8  ;;  %v877_v13 = vld [vmem:[#allocation2 + $0x18] sm:$0xff]  ;;  %v66_v15 = vld [vmem:[#allocation7] sm:$0xff]  ;;  %v67_v16 = vld [vmem:[#allocation7 + $0x8] sm:$0xff]  ;;  %s751_s8 = scalar_lea.vmem %s492_s7, 128  ;;  %p756_p11 = scmp.lt.s32.totalorder %s492_s7, %s492_s7 }
  0x3a   :  { %626 = vmatpush3.bf16.msra.mxu1 %v625_v5  ;;  %v649_v17 = vpack.c.bf16 %v67_v16, %v66_v15  ;;  %v68_v18 = vld [vmem:[#allocation7 + $0x10] sm:$0xff]  ;;  %v69_v19 = vld [vmem:[#allocation7 + $0x18] sm:$0xff]  ;;  %v70_v21 = vld [vmem:[#allocation7 + $0x20] sm:$0xff]  ;;  %p752_p10 = scmp.ne.s32.totalorder %s492_s7, %s751_s8  ;;  %p757_p12 = scmp.lt.s32.totalorder %s751_s8, %s751_s8 }
  0x3b   :  { %627 = vmatprep.subr.bf16.mxu1 %v784_v0  ;;  %v875_v12 = vmin.f32 %v243_v9, %v245_v11  ;;  %v652_v20 = vpack.c.bf16 %v69_v19, %v68_v18  ;;  %v71_v22 = vld [vmem:[#allocation7 + $0x28] sm:$0xff]  ;;  %v72_v24 = vld [vmem:[#allocation7 + $0x30] sm:$0xff]  ;;  %v73_v25 = vld [vmem:[#allocation7 + $0x38] sm:$0xff] }
  0x3c   :  { %650 = vmatpush3.bf16.msra.mxu0 %v649_v17  ;;  %v655_v23 = vpack.c.bf16 %v71_v22, %v70_v21  ;;  %v658_v26 = vpack.c.bf16 %v73_v25, %v72_v24  ;;  %v74_v27 = vld [vmem:[#allocation7 + $0x40] sm:$0xff]  ;;  %v75_v28 = vld [vmem:[#allocation7 + $0x48] sm:$0xff]  ;;  %v76_v30 = vld [vmem:[#allocation7 + $0x50] sm:$0xff]  ;;  %p758_p13 = por %p757_p12, %p756_p11 }
  0x3d   :  { %v399_v14 = vmin.f32 %v875_v12, %v877_v13  ;;  %651 = vmatprep.subr.bf16.mxu0 %v784_v0  ;;  %v661_v29 = vpack.c.bf16 %v75_v28, %v74_v27  ;;  %v77_v31 = vld [vmem:[#allocation7 + $0x58] sm:$0xff]  ;;  %v78_v33 = vld [vmem:[#allocation7 + $0x60] sm:$0xff]  ;;  %v79_v34 = vld [vmem:[#allocation7 + $0x68] sm:$0xff] }
  0x3e   :  { %629 = vmatpush3.bf16.msra.mxu1 %v628_v10  ;;  %v664_v32 = vpack.c.bf16 %v77_v31, %v76_v30  ;;  %v667_v35 = vpack.c.bf16 %v79_v34, %v78_v33  ;;  %v80_v36 = vld [vmem:[#allocation7 + $0x70] sm:$0xff]  ;;  %v81_v37 = vld [vmem:[#allocation7 + $0x78] sm:$0xff]  ;;  %v501_v41 = vld [vmem:[%s926_s2] ss:$0 sm:$0xff]  ;;  %p759_p0 = pnand %p758_p13, %p752_p10 }
  0x3f   :  { %630 = vmatprep.subr.bf16.mxu1 %v784_v0  ;;  %v670_v38 = vpack.c.bf16 %v81_v37, %v80_v36  ;;  %v506_v60 = vld [vmem:[%s928_s4] ss:$0 sm:$0xff] }
  0x40   :  { %653 = vmatpush3.bf16.msra.mxu0 %v652_v20 }
  0x41   :  { %554 = vmatmul.mubr.msk.f32.vlgmr.msra.gmra.mrb[0].mxu1 %vm91_vm1, %v84_v7  ;;  %654 = vmatprep.subr.bf16.mxu0 %v784_v0 }
  0x42   :  { %632 = vmatpush3.bf16.msra.mxu1 %v625_v5  ;;  %564 = vmatprep.mubr.msk.f32.mxu1 %vm785_vm0, %v786_v1 }
  0x43   :  { %633 = vmatprep.subr.bf16.mxu1 %v784_v0 }
  0x44   :  { %656 = vmatpush3.bf16.msra.mxu0 %v655_v23 }
  0x45   :  { %657 = vmatprep.subr.bf16.mxu0 %v784_v0 }
  0x46   :  { %635 = vmatpush3.bf16.msra.mxu1 %v628_v10 }
  0x47   :  { %636 = vmatprep.subr.bf16.mxu1 %v784_v0 }
  0x48   :  { %659 = vmatpush3.bf16.msra.mxu0 %v658_v26 }
  0x49   :  { %565 = vmatmul.mubr.msk.f32.vlgmr.msra.gmra.mrb[2].mxu1 %vm91_vm1, %v167_v8  ;;  %660 = vmatprep.subr.bf16.mxu0 %v784_v0 }
  0x4a   :  { %638 = vmatpush3.bf16.msra.mxu1 %v625_v5  ;;  %575 = vmatprep.mubr.msk.f32.mxu1 %vm785_vm0, %v786_v1 }
  0x4b   :  { %639 = vmatprep.subr.bf16.mxu1 %v784_v0 }
  0x4c   :  { %662 = vmatpush3.bf16.msra.mxu0 %v661_v29 }
  0x4d   :  { %663 = vmatprep.subr.bf16.mxu0 %v784_v0 }
  0x4e   :  { %641 = vmatpush3.bf16.msra.mxu1 %v628_v10 }
  0x4f   :  { %642 = vmatprep.subr.bf16.mxu1 %v784_v0 }
  0x50   :  { %665 = vmatpush3.bf16.msra.mxu0 %v664_v32 }
  0x51   :  { %576 = vmatmul.mubr.msk.f32.vlgmr.msra.gmra.mrb[4].mxu1 %vm91_vm1, %v245_v11  ;;  %666 = vmatprep.subr.bf16.mxu0 %v784_v0 }
  0x52   :  { %644 = vmatpush3.bf16.msra.mxu1 %v625_v5  ;;  %586 = vmatprep.mubr.msk.f32.mxu1 %vm785_vm0, %v786_v1 }
  0x53   :  { %645 = vmatprep.subr.bf16.mxu1 %v784_v0 }
  0x54   :  { %668 = vmatpush3.bf16.msra.mxu0 %v667_v35 }
  0x55   :  { %669 = vmatprep.subr.bf16.mxu0 %v784_v0 }
  0x56   :  { %647 = vmatpush3.bf16.msra.mxu1 %v628_v10 }
  0x58   :  { %671 = vmatpush3.bf16.msra.mxu0 %v670_v38 }
  0x59   :  { %587 = vmatmul.mubr.msk.f32.vlgmr.msra.gmra.mrb[6].mxu1 %vm91_vm1, %v877_v13 }
 0x114   :  { %v161_v39 = vpop.f32.mrb[0].mxu1 }
 0x115   :  { %v555_v40 = vpop.f32.mrb[1].mxu1  ;;  %v162_v42 = vadd.f32 %v501_v41, %v161_v39 }
 0x117   :  { %v165_v46 = vmax.f32 %v162_v42, 0.0 }
 0x11c   :  { %v237_v43 = vpop.f32.mrb[2].mxu1 }
 0x11d   :  { %v238_v44 = vadd.f32 %v501_v41, %v237_v43  ;;  %v566_v45 = vpop.f32.mrb[3].mxu1 }
 0x11f   :  { %v241_v47 = vmax.f32 %v238_v44, 0.0 }
 0x121   :  { %v242_v48 = vadd.f32 %v241_v47, %v165_v46 }
 0x124   :  { %v315_v49 = vpop.f32.mrb[4].mxu1 }
 0x125   :  { %v316_v50 = vadd.f32 %v501_v41, %v315_v49  ;;  %v577_v51 = vpop.f32.mrb[5].mxu1 }
 0x127   :  { %v319_v52 = vmax.f32 %v316_v50, 0.0 }
 0x129   :  { %v320_v53 = vadd.f32 %v319_v52, %v242_v48 }
 0x12c   :  { %v393_v54 = vpop.f32.mrb[6].mxu1 }
 0x12d   :  { %v394_v55 = vadd.f32 %v501_v41, %v393_v54  ;;  %v588_v56 = vpop.f32.mrb[7].mxu1 }
 0x12f   :  { %v397_v57 = vmax.f32 %v394_v55, 0.0 }
 0x131   :  { %v398_v58 = vadd.f32 %v397_v57, %v320_v53 }
 0x133   :  { %v400_v59 = vmul.f32 0.25, %v398_v58 }
 0x135   :  { %622 = vmatmul.mubr.f32.vlgmr.msra.gmra.mrb[0].mxu0 %v400_v59 }
 0x208   :  { %v473_v61 = vpop.f32.mrb[0].mxu0 }
 0x209   :  { %v474_v62 = vadd.f32 %v506_v60, %v473_v61  ;;  %v623_v63 = vpop.f32.mrb[1].mxu0 }
 0x20b   :  { %v507_v0 = vmul.f32 -1.442695, %v474_v62 }
 0x20d   :  { %681 = vpow2.f32 %v507_v0 }
 0x217   :  { %v682_v1 = vpop.eup %681 }
 0x218   :  { %v480_v2 = vadd.f32 1.0, %v682_v1 }
 0x21a   :  { %683 = vrcp.f32 %v480_v2 }
 0x224   :  { %v684_v3 = vpop.eup %683 }
 0x225   :  { %v483_v4 = vmul.f32 %v684_v3, %v399_v14 }
 0x227   :  { %484 = vst.msk [vmem:[#allocation8] sm:$0xff] %vm91_vm1, %v483_v4 }
 0x228   :  { %762 = shalt.err (!%p759_p0)
}
 0x229   :  { %s763_s10 = scalar_lea.hbm %s929_s5, 128 }
 0x22a   :  { %p764_p1 = scmp.ne.s32.totalorder %s929_s5, %s763_s10  ;;  %p767_p2 = scmp.lt.u32.totalorder %s763_s10, %s929_s5 }
 0x22c   :  { %p769_p3 = pnand %p767_p2, %p764_p1 }
 0x22e   :  { %772 = shalt.err (!%p769_p3)
}
 0x22f   :  { %494 = dma.vmem_to_hbm [thread:$0]  %s492_s7, 128, %s929_s5, [#allocation4]  }
 0x230   :  { %777 = dma.done.wait [#allocation4], 128  }
 0x231   :  { %778 = vsyncadd [#allocation4], 4294967168 }
 0x232   :  { %498 = vsyncpa [#allocation3], 1 }
 0x233   :  { %499 = vsyncpa [#allocation6], 1 }
 0x234   :  { %500 = vsyncpa [#allocation4], 1 }

</bundles_post_ra>
